<compile_context>
chip_gen: v7x
topology: tpu7x:2x2x1
jax: 0.10.0
libtpu: 0.0.40
codegen_flags: <defaults>
</compile_context>

<pallas_src>
import jax
import jax.numpy as jnp
import numpy as np
from jax import lax
from jax.experimental import pallas as pl
from jax.experimental.pallas import tpu as pltpu

EPS = 1e-5  # PyTorch BatchNorm1d default eps

# Raises v5e's 16 MiB default scoped VMEM, == v6e/v7x default.  At production
# tile sizes re-derive from the double-buffered working set (v7x: 64 MiB phys).
_VMEM_LIMIT = 32 * 1024 * 1024


# --------------------------------------------------------------------------- #
# Kernel 1 (pass 1): fusion Linear y = audio @ Wa + (init @ Wi + b), written in
# time-major layout, plus per-feature sum / sum-of-squares accumulation for the
# two-pass BatchNorm.  Gridded over time-chunks of Tc*n rows.
# --------------------------------------------------------------------------- #
def fusion_stats_kernel(a_ref, init_ref, wa_ref, y_ref, sum_ref, ssq_ref):
    @pl.when(pl.program_id(0) == 0)
    def _():
        sum_ref[...] = jnp.zeros_like(sum_ref)
        ssq_ref[...] = jnp.zeros_like(ssq_ref)

    # audio @ Wa on the MXU + VPU broadcast-add of the precomputed init/bias tile
    y = jnp.dot(a_ref[...], wa_ref[...],
                preferred_element_type=jnp.float32) + init_ref[...]
    y_ref[...] = y

    # BatchNorm pass 1: statistics over ALL padded rows (matches reference).
    sum_ref[...] += jnp.sum(y, axis=0, keepdims=True)
    ssq_ref[...] += jnp.sum(y * y, axis=0, keepdims=True)


def fusion_stats(audio_tm, init_tile, wa, row_block):
    M, A = audio_tm.shape
    C = wa.shape[1]
    K = M // row_block
    return pl.pallas_call(
        fusion_stats_kernel,
        out_shape=(jax.ShapeDtypeStruct((M, C), jnp.float32),   # y (time-major)
                   jax.ShapeDtypeStruct((1, C), jnp.float32),   # sum(y)
                   jax.ShapeDtypeStruct((1, C), jnp.float32)),  # sum(y*y)
        grid=(K,),
        in_specs=[
            pl.BlockSpec((row_block, A), lambda j: (j, 0)),
            pl.BlockSpec((row_block, C), lambda j: (0, 0)),     # resident tile
            pl.BlockSpec((A, C), lambda j: (0, 0)),             # resident weights
        ],
        out_specs=(pl.BlockSpec((row_block, C), lambda j: (j, 0)),
                   pl.BlockSpec((1, C), lambda j: (0, 0)),
                   pl.BlockSpec((1, C), lambda j: (0, 0))),
        compiler_params=pltpu.CompilerParams(
            # stats accumulate across the grid axis -> must stay sequential
            dimension_semantics=("arbitrary",),
            vmem_limit_bytes=_VMEM_LIMIT),
    )(audio_tm, init_tile, wa)


# --------------------------------------------------------------------------- #
# Kernel 2 (pass 2): per T-chunk, fused BN-normalize + hoisted input projection
# (in VMEM, no Z round-trip), then the bidirectional LSTM recurrence with h/c
# carried in VMEM scratch across grid steps.  bias=False, packed-seq semantics.
# --------------------------------------------------------------------------- #
def bilstm_kernel(len_ref, scale_ref, shift_ref, yf_ref, yb_ref,
                  wih_f_ref, wih_b_ref, whh_ref, of_ref, ob_ref,
                  zf_scr, zb_scr, hf_scr, cf_scr, hb_scr, cb_scr):
    j = pl.program_id(0)
    row_block = yf_ref.shape[0]
    H = of_ref.shape[2]
    G = 4 * H
    n = hf_scr.shape[0]
    Tc = row_block // n
    T = pl.num_programs(0) * Tc

    @pl.when(j == 0)
    def _():
        hf_scr[...] = jnp.zeros_like(hf_scr)
        cf_scr[...] = jnp.zeros_like(cf_scr)
        hb_scr[...] = jnp.zeros_like(hb_scr)
        cb_scr[...] = jnp.zeros_like(cb_scr)

    scale = scale_ref[...]
    shift = shift_ref[...]
    # Fused BN-normalise + hoisted input projection for this chunk, both
    # directions, entirely in VMEM (one big MXU matmul per direction per chunk).
    zf_scr[...] = jnp.dot(yf_ref[...] * scale + shift, wih_f_ref[...],
                          preferred_element_type=jnp.float32)
    zb_scr[...] = jnp.dot(yb_ref[...] * scale + shift, wih_b_ref[...],
                          preferred_element_type=jnp.float32)

    lengths = len_ref[...]                               # (n, 1) int32

    def gates(zz, c):
        i = jax.nn.sigmoid(zz[:, 0:H])
        f = jax.nn.sigmoid(zz[:, H:2 * H])
        g = jnp.tanh(zz[:, 2 * H:3 * H])
        o = jax.nn.sigmoid(zz[:, 3 * H:4 * H])
        c_new = f * c + i * g
        h_new = o * jnp.tanh(c_new)
        return h_new, c_new

    def body(s, carry):
        tf = j * Tc + s                       # forward global timestep
        tb = T - 1 - tf                       # backward global timestep
        sl_b = Tc - 1 - s                     # backward local timestep in chunk
        rf = pl.multiple_of(s * n, n)         # fwd row offset in this chunk
        rb = pl.multiple_of(sl_b * n, n)      # bwd row offset in this chunk

        hf = hf_scr[...]
        cf = cf_scr[...]
        hb = hb_scr[...]
        cb = cb_scr[...]

        # One fused recurrent matmul (K = 2H = 256) through block-diag weights.
        hc = jnp.concatenate([hf, hb], axis=1)                          # (n, 2H)
        r = jnp.dot(hc, whh_ref[...], preferred_element_type=jnp.float32)  # (n, 8H)
        zzf = zf_scr[pl.ds(rf, n), :] + r[:, 0:G]
        zzb = zb_scr[pl.ds(rb, n), :] + r[:, G:2 * G]

        hf_new, cf_new = gates(zzf, cf)
        hb_new, cb_new = gates(zzb, cb)

        # Hoisted mask broadcasts; packed-sequence semantics (freeze state,
        # zero output for t >= lengths[b]).
        mf = jnp.broadcast_to(tf < lengths, (n, H))
        mb = jnp.broadcast_to(tb < lengths, (n, H))

        of_ref[s, :, :] = jnp.where(mf, hf_new, 0.0)       # dense (n x H) store
        ob_ref[sl_b, :, :] = jnp.where(mb, hb_new, 0.0)
        hf_scr[...] = jnp.where(mf, hf_new, hf)
        cf_scr[...] = jnp.where(mf, cf_new, cf)
        hb_scr[...] = jnp.where(mb, hb_new, hb)
        cb_scr[...] = jnp.where(mb, cb_new, cb)
        return carry

    lax.fori_loop(0, Tc, body, 0, unroll=4)


def bilstm(y, len2d, scale, shift, wih_f, wih_b, whh_bd, t_chunk):
    M, C = y.shape
    n = len2d.shape[0]
    T = M // n
    H = whh_bd.shape[0] // 2
    G = 4 * H
    row_block = t_chunk * n
    K = T // t_chunk

    def const_spec(shape):
        return pl.BlockSpec(shape, lambda j: tuple(0 for _ in shape))

    return pl.pallas_call(
        bilstm_kernel,
        out_shape=(jax.ShapeDtypeStruct((T, n, H), jnp.float32),   # fwd half
                   jax.ShapeDtypeStruct((T, n, H), jnp.float32)),  # bwd half
        grid=(K,),
        in_specs=[
            const_spec((n, 1)),                                    # lengths
            const_spec((1, C)),                                    # BN scale
            const_spec((1, C)),                                    # BN shift
            pl.BlockSpec((row_block, C), lambda j: (j, 0)),        # y, ascending
            pl.BlockSpec((row_block, C), lambda j: (K - 1 - j, 0)),  # y, descending
            const_spec((C, G)),                                    # w_ih_f
            const_spec((C, G)),                                    # w_ih_b
            const_spec((2 * H, 2 * G)),                            # block-diag w_hh
        ],
        out_specs=(pl.BlockSpec((t_chunk, n, H), lambda j: (j, 0, 0)),
                   pl.BlockSpec((t_chunk, n, H), lambda j: (K - 1 - j, 0, 0))),
        scratch_shapes=[
            pltpu.VMEM((row_block, G), jnp.float32),   # z fwd chunk
            pltpu.VMEM((row_block, G), jnp.float32),   # z bwd chunk
            pltpu.VMEM((n, H), jnp.float32),           # h fwd (carried)
            pltpu.VMEM((n, H), jnp.float32),           # c fwd (carried)
            pltpu.VMEM((n, H), jnp.float32),           # h bwd (carried)
            pltpu.VMEM((n, H), jnp.float32),           # c bwd (carried)
        ],
        compiler_params=pltpu.CompilerParams(
            # recurrence carries state across chunks -> sequential grid
            dimension_semantics=("arbitrary",),
            vmem_limit_bytes=_VMEM_LIMIT),
    )(len2d, scale, shift, y, y,
      wih_f.astype(jnp.float32), wih_b.astype(jnp.float32), whh_bd)


# --------------------------------------------------------------------------- #
# Wrapper
# --------------------------------------------------------------------------- #
def _pick_t_chunk(T, n, target_rows=512):
    best = T
    for tc in range(1, T + 1):
        if T % tc == 0 and (tc * n) % 8 == 0 and tc * n <= target_rows:
            best = tc
    return best


def audio_to_face(audio, init, lengths, params, t_chunk=None):
    """Forward pass of AudioToFace. Returns (B, T, 2*hidden), zero-padded past lengths."""
    n, T, A = audio.shape
    H = params["w_hh_f"].shape[0]
    if t_chunk is None:
        t_chunk = _pick_t_chunk(T, n)
    assert T % t_chunk == 0
    row_block = t_chunk * n
    M = T * n
    assert row_block % 8 == 0 or row_block == M

    # Time-major rows (t, b): dense per-step tiles in the LSTM kernel.
    audio_tm = audio.astype(jnp.float32).transpose(1, 0, 2).reshape(M, A)

    w_fusion = params["w_fusion"].astype(jnp.float32)
    wa = w_fusion[:A]                                              # (A, 192)
    # init contribution + bias: tiny XLA matmul, tiled to one resident block.
    init_proj = (init.astype(jnp.float32).reshape(n, -1) @ w_fusion[A:]
                 + params["b_fusion"])                             # (n, 192)
    init_tile = jnp.tile(init_proj, (t_chunk, 1))                  # (Tc*n, 192)

    y, ysum, yssq = fusion_stats(audio_tm, init_tile, wa, row_block)

    # Finish the two-pass BatchNorm (O(192) work) and fold the affine.
    mean = ysum / M
    var = yssq / M - mean * mean            # biased variance over all padded rows
    scale = params["gamma"] * lax.rsqrt(var + EPS)                 # (1, 192)
    shift = params["beta"] - mean * scale                          # (1, 192)

    # Block-diagonal recurrent weights: one K=2H MXU pass per step for both dirs.
    zpad = jnp.zeros((H, 4 * H), jnp.float32)
    whh_bd = jnp.concatenate(
        [jnp.concatenate([params["w_hh_f"].astype(jnp.float32), zpad], axis=1),
         jnp.concatenate([zpad, params["w_hh_b"].astype(jnp.float32)], axis=1)],
        axis=0)                                                    # (2H, 8H)

    len2d = lengths.astype(jnp.int32).reshape(n, 1)
    of, ob = bilstm(y, len2d, scale, shift,
                    params["w_ih_f"], params["w_ih_b"], whh_bd, t_chunk)

    # One transpose back to batch-first (B, T, 2H).
    # TODO(synk): PyTorch pad_packed_sequence truncates T to max(lengths); here
    #             lengths are chosen with max == T so shapes match directly.
    return jnp.concatenate([of, ob], axis=2).transpose(1, 0, 2)


# --------------------------------------------------------------------------- #
# Pure-JAX reference (same math as the PyTorch module) for correctness check
# --------------------------------------------------------------------------- #
def reference(audio, init, lengths, params):
    n, T, _ = audio.shape
    x = jnp.concatenate([audio, jnp.tile(init, (1, T, 1))], axis=2).reshape(n * T, -1)
    y = x @ params["w_fusion"] + params["b_fusion"]
    mean = y.mean(0, keepdims=True)
    var = ((y - mean) ** 2).mean(0, keepdims=True)
    y = params["gamma"] * (y - mean) * lax.rsqrt(var + EPS) + params["beta"]
    y = y.reshape(n, T, -1)
    H = params["w_hh_f"].shape[0]

    def run_dir(w_ih, w_hh, reverse):
        h = jnp.zeros((n, H), jnp.float32)
        c = jnp.zeros((n, H), jnp.float32)
        outs = [None] * T
        ts = range(T - 1, -1, -1) if reverse else range(T)
        for t in ts:
            m = (t < lengths).astype(jnp.float32)[:, None]
            z = y[:, t, :] @ w_ih + h @ w_hh
            i = jax.nn.sigmoid(z[:, 0:H])
            f = jax.nn.sigmoid(z[:, H:2 * H])
            g = jnp.tanh(z[:, 2 * H:3 * H])
            o = jax.nn.sigmoid(z[:, 3 * H:4 * H])
            c_new = f * c + i * g
            h_new = o * jnp.tanh(c_new)
            c = m * c_new + (1.0 - m) * c
            h = m * h_new + (1.0 - m) * h
            outs[t] = m * h_new
        return jnp.stack(outs, axis=1)

    out_f = run_dir(params["w_ih_f"], params["w_hh_f"], reverse=False)
    out_b = run_dir(params["w_ih_b"], params["w_hh_b"], reverse=True)
    return jnp.concatenate([out_f, out_b], axis=2)


# --------------------------------------------------------------------------- #
if __name__ == "__main__":
    n, T = 2, 16
    audio_size, init_size = 100, 18          # 100 + 18 = 118 (fusion input size)
    lstm_input, hidden = 192, 128            # reshape(-1, 192) forces lstm_input=192
    t_chunk = 4                              # 4 T-chunks -> exercises the pipeline

    key = jax.random.PRNGKey(0)
    ks = jax.random.split(key, 10)
    audio = jax.random.normal(ks[0], (n, T, audio_size), jnp.float32)
    init = jax.random.normal(ks[1], (n, 1, init_size), jnp.float32)
    lengths = jnp.array([T, 11], dtype=jnp.int32)     # max(lengths) == T

    s = 0.05
    params = {
        "w_fusion": s * jax.random.normal(ks[2], (118, lstm_input), jnp.float32),
        "b_fusion": s * jax.random.normal(ks[3], (1, lstm_input), jnp.float32),
        "gamma": 1.0 + s * jax.random.normal(ks[4], (1, lstm_input), jnp.float32),
        "beta": s * jax.random.normal(ks[5], (1, lstm_input), jnp.float32),
        "w_ih_f": s * jax.random.normal(ks[6], (lstm_input, 4 * hidden), jnp.float32),
        "w_hh_f": s * jax.random.normal(ks[7], (hidden, 4 * hidden), jnp.float32),
        "w_ih_b": s * jax.random.normal(ks[8], (lstm_input, 4 * hidden), jnp.float32),
        "w_hh_b": s * jax.random.normal(ks[9], (hidden, 4 * hidden), jnp.float32),
    }

    out = jax.block_until_ready(audio_to_face(audio, init, lengths, params,
                                              t_chunk=t_chunk))
    ref = jax.block_until_ready(reference(audio, init, lengths, params))
    np.testing.assert_allclose(np.asarray(out), np.asarray(ref), atol=2e-3, rtol=2e-3)
    print("KERNEL_OK")
</pallas_src>

<mosaic_0001>
module attributes {stable_mosaic.version = 11 : i64} {
  func.func @fusion_stats_kernel(%arg0: i32, %arg1: memref<8x100xf32, #tpu.memory_space<vmem>>, %arg2: memref<8x192xf32, #tpu.memory_space<vmem>>, %arg3: memref<100x192xf32, #tpu.memory_space<vmem>>, %arg4: memref<8x192xf32, #tpu.memory_space<vmem>>, %arg5: memref<1x192xf32, #tpu.memory_space<vmem>>, %arg6: memref<1x192xf32, #tpu.memory_space<vmem>>) attributes {dimension_semantics = [#tpu.dimension_semantics<arbitrary>], iteration_bounds = array<i64: 4>, scalar_prefetch = 0 : i64, scratch_operands = 0 : i64, tpu.core_type = #tpu.core_type<tc>, window_params = [{transform_indices = @transform_0, window_bounds = array<i64: 8, 100>}, {pipeline_mode = #tpu.pipeline_mode<synchronous>, transform_indices = @transform_1, window_bounds = array<i64: 8, 192>}, {pipeline_mode = #tpu.pipeline_mode<synchronous>, transform_indices = @transform_2, window_bounds = array<i64: 100, 192>}, {transform_indices = @transform_3, window_bounds = array<i64: 8, 192>}, {pipeline_mode = #tpu.pipeline_mode<synchronous>, transform_indices = @transform_4, window_bounds = array<i64: 1, 192>}, {pipeline_mode = #tpu.pipeline_mode<synchronous>, transform_indices = @transform_5, window_bounds = array<i64: 1, 192>}]} {
    %c0_i32 = arith.constant 0 : i32
    %0 = arith.cmpi eq, %arg0, %c0_i32 : i32
    %1 = arith.extui %0 : i1 to i32
    %c0_i32_0 = arith.constant 0 : i32
    %2 = arith.cmpi ne, %1, %c0_i32_0 : i32
    scf.if %2 {
      %cst_18 = arith.constant 0.000000e+00 : f32
      %20 = vector.broadcast %cst_18 : f32 to vector<1x192xf32>
      %c0_19 = arith.constant 0 : index
      %c0_20 = arith.constant 0 : index
      %21 = vector.load %arg5[%c0_19, %c0_20] : memref<1x192xf32, #tpu.memory_space<vmem>>, vector<1x192xf32>
      tpu.vector_store %arg5[%c0_19, %c0_20], %20 {strides = array<i32>} : memref<1x192xf32, #tpu.memory_space<vmem>>, vector<1x192xf32>,
      %cst_21 = arith.constant 0.000000e+00 : f32
      %22 = vector.broadcast %cst_21 : f32 to vector<1x192xf32>
      %c0_22 = arith.constant 0 : index
      %c0_23 = arith.constant 0 : index
      %23 = vector.load %arg6[%c0_22, %c0_23] : memref<1x192xf32, #tpu.memory_space<vmem>>, vector<1x192xf32>
      tpu.vector_store %arg6[%c0_22, %c0_23], %22 {strides = array<i32>} : memref<1x192xf32, #tpu.memory_space<vmem>>, vector<1x192xf32>,
    } else {
    }
    %c0 = arith.constant 0 : index
    %c0_1 = arith.constant 0 : index
    %3 = vector.load %arg1[%c0, %c0_1] : memref<8x100xf32, #tpu.memory_space<vmem>>, vector<8x100xf32>
    %c0_2 = arith.constant 0 : index
    %c0_3 = arith.constant 0 : index
    %4 = vector.load %arg3[%c0_2, %c0_3] : memref<100x192xf32, #tpu.memory_space<vmem>>, vector<100x192xf32>
    %cst = arith.constant dense<0.000000e+00> : vector<8x192xf32>
    %5 = tpu.matmul %3, %4, %cst {dimension_numbers = #tpu.dot_dimension_numbers<[1], [0], [0], [1], [0, 0, 1, 1], [], []>} : vector<8x100xf32>, vector<100x192xf32>, vector<8x192xf32> -> vector<8x192xf32>
    %c0_4 = arith.constant 0 : index
    %c0_5 = arith.constant 0 : index
    %6 = vector.load %arg2[%c0_4, %c0_5] : memref<8x192xf32, #tpu.memory_space<vmem>>, vector<8x192xf32>
    %7 = arith.addf %5, %6 : vector<8x192xf32>
    %c0_6 = arith.constant 0 : index
    %c0_7 = arith.constant 0 : index
    %8 = vector.load %arg4[%c0_6, %c0_7] : memref<8x192xf32, #tpu.memory_space<vmem>>, vector<8x192xf32>
    tpu.vector_store %arg4[%c0_6, %c0_7], %7 {strides = array<i32>} : memref<8x192xf32, #tpu.memory_space<vmem>>, vector<8x192xf32>,
    %c0_8 = arith.constant 0 : index
    %c0_9 = arith.constant 0 : index
    %9 = vector.load %arg5[%c0_8, %c0_9] : memref<1x192xf32, #tpu.memory_space<vmem>>, vector<1x192xf32>
    %cst_10 = arith.constant dense<0.000000e+00> : vector<192xf32>
    %10 = vector.multi_reduction <add>, %7, %cst_10 [0] : vector<8x192xf32> to vector<192xf32>
    %11 = vector.shape_cast %10 : vector<192xf32> to vector<1x192xf32>
    %12 = arith.addf %9, %11 : vector<1x192xf32>
    %c0_11 = arith.constant 0 : index
    %c0_12 = arith.constant 0 : index
    %13 = vector.load %arg5[%c0_11, %c0_12] : memref<1x192xf32, #tpu.memory_space<vmem>>, vector<1x192xf32>
    tpu.vector_store %arg5[%c0_11, %c0_12], %12 {strides = array<i32>} : memref<1x192xf32, #tpu.memory_space<vmem>>, vector<1x192xf32>,
    %c0_13 = arith.constant 0 : index
    %c0_14 = arith.constant 0 : index
    %14 = vector.load %arg6[%c0_13, %c0_14] : memref<1x192xf32, #tpu.memory_space<vmem>>, vector<1x192xf32>
    %15 = arith.mulf %7, %7 : vector<8x192xf32>
    %cst_15 = arith.constant dense<0.000000e+00> : vector<192xf32>
    %16 = vector.multi_reduction <add>, %15, %cst_15 [0] : vector<8x192xf32> to vector<192xf32>
    %17 = vector.shape_cast %16 : vector<192xf32> to vector<1x192xf32>
    %18 = arith.addf %14, %17 : vector<1x192xf32>
    %c0_16 = arith.constant 0 : index
    %c0_17 = arith.constant 0 : index
    %19 = vector.load %arg6[%c0_16, %c0_17] : memref<1x192xf32, #tpu.memory_space<vmem>>, vector<1x192xf32>
    tpu.vector_store %arg6[%c0_16, %c0_17], %18 {strides = array<i32>} : memref<1x192xf32, #tpu.memory_space<vmem>>, vector<1x192xf32>,
    return
  }
  func.func @transform_0(%arg0: i32) -> (i32, i32) {
    %c0_i32 = arith.constant 0 : i32
    %c0_i32_0 = arith.constant 0 : i32
    return %arg0, %c0_i32 : i32, i32
  }
  func.func @transform_1(%arg0: i32) -> (i32, i32) {
    %c0_i32 = arith.constant 0 : i32
    %c0_i32_0 = arith.constant 0 : i32
    %c0_i32_1 = arith.constant 0 : i32
    return %c0_i32, %c0_i32_0 : i32, i32
  }
  func.func @transform_2(%arg0: i32) -> (i32, i32) {
    %c0_i32 = arith.constant 0 : i32
    %c0_i32_0 = arith.constant 0 : i32
    %c0_i32_1 = arith.constant 0 : i32
    return %c0_i32, %c0_i32_0 : i32, i32
  }
  func.func @transform_3(%arg0: i32) -> (i32, i32) {
    %c0_i32 = arith.constant 0 : i32
    %c0_i32_0 = arith.constant 0 : i32
    return %arg0, %c0_i32 : i32, i32
  }
  func.func @transform_4(%arg0: i32) -> (i32, i32) {
    %c0_i32 = arith.constant 0 : i32
    %c0_i32_0 = arith.constant 0 : i32
    %c0_i32_1 = arith.constant 0 : i32
    return %c0_i32, %c0_i32_0 : i32, i32
  }
  func.func @transform_5(%arg0: i32) -> (i32, i32) {
    %c0_i32 = arith.constant 0 : i32
    %c0_i32_0 = arith.constant 0 : i32
    %c0_i32_1 = arith.constant 0 : i32
    return %c0_i32, %c0_i32_0 : i32, i32
  }
}

</mosaic_0001>

<bundles_post_ra>
// kernel: tpu_custom_call.1
= control target key start
LH: loop header
LB: loop body
LE: loop exit
PB: predicated region body
PF: predicated region fallthrough
CT: control target
= control target key end

     0   :  { %11 = vsyncpa [#allocation3], 0  ;;  %s1044_s0 = inlined_call_operand.vmem [shape: f32[32,100], index: 0, kind: input, shape index: {}]   ;;  %s1045_s1 = inlined_call_operand.vmem [shape: f32[8,192], index: 1, kind: input, shape index: {}]   ;;  %s1046_s2 = inlined_call_operand.vmem [shape: f32[100,192], index: 2, kind: input, shape index: {}]   ;;  %s1047_s3 = inlined_call_operand.hbm [shape: f32[32,192], index: 3, kind: output, shape index: {0}]   ;;  %s1048_s4 = inlined_call_operand.hbm [shape: f32[1,192], index: 4, kind: output, shape index: {1}]   ;;  %s1049_s5 = inlined_call_operand.hbm [shape: f32[1,192], index: 5, kind: output, shape index: {2}]  }
   0x1   :  { %13 = vsyncpa [#allocation3 + $0x1], 0 }
   0x2   :  { %14 = vsyncpa [#allocation5], 0  ;;  %s787_s18 = smov 0   ;;  %s789_s19 = smov 0  }
   0x3   :  { %s791_s20 = smov 0   ;;  %s793_s21 = smov 0  }
   0x4 LB: > { %s808_s22 = sadd.s32 4294967295, %s749_s21   ;;  %s531_s23 = sadd.s32 4294967294, %s749_s21   ;;  %s749_s21 = sphi %s793_s21, %s1057_s21   ;;  %s745_s20 = sphi %s791_s20, %s1056_s20   ;;  %s741_s19 = sphi %s789_s19, %s1055_s19   ;;  %s737_s18 = sphi %s787_s18, %s1054_s18  }
   0x5   : > { %s812_s24 = sadd.s32 1, %s749_s21   ;;  %s95_s25 = sadd.s32 1, %s745_s20 }
   0x6   : > { %s92_s26 = ssub.s32 %s749_s21, %s812_s24  ;;  %p105_p0 = scmp.ne.s32.totalorder %s745_s20, %s741_s19 }
   0x7   : > { %p93_p1 = scmp.eq.s32.totalorder %s92_s26, 0  ;;  %p106_p2 = scmp.eq.s32.totalorder %s808_s22, 3 }
   0x8   : > { %p111_p3 = scmp.ne.s32.totalorder %s741_s19, %s737_s18  ;;  %p112_p4 = scmp.eq.s32.totalorder %s531_s23, 3 }
   0x9   : > { %s823_s27 = scalar_select %p93_p1, %s745_s20, %s95_s25  }
   0xa   : > { %p827_p5 = por %p106_p2, %p105_p0  ;;  %p831_p6 = por %p112_p4, %p111_p3 }
   0xb   : > { %p534_p7 = scmp.ge.s32.totalorder %s749_s21, 1  ;;  %p185_p8 = scmp.lt.s32.totalorder %s749_s21, 5 }
   0xd   : > { %p186_p9 = pnand %p534_p7, %p185_p8 }
   0xe   : > { %s205_s30 = sand.u32 (!%p186_p9), 1, %s741_s19   ;;  %p212_p10 = scmp.lt.s32.totalorder (!%p186_p9), %s808_s22, 3 }
   0xf   : > { %189 = sbr.rel (%p186_p9) target bundleno = 343 (0x157), region = 32  ;;  %s535_s6 = sshll.u32 (!%p186_p9), %s205_s30, 4 }
  0x10   : > { %s847_s12 = scalar_lea.vmem (!%p186_p9), [#allocation2], %s535_s6  ;;  %p537_p11 = scmp.ne.s32.totalorder (!%p186_p9), %s808_s22, 0 }
  0x16   : > { %s213_s7 = scalar_select %p212_p10, %s808_s22, 3 }
  0x17   : > { %219 = sbr.rel (%p537_p11) target bundleno = 30 (0x1e), region = 36  ;;  %v220_v0 = vlaneseq (!%p537_p11)  ;;  %v751_v1 = vmov (!%p537_p11), 0.0  }
  0x18   : > { %s536_s8 = sshll.u32 %s213_s7, 3 }
  0x19   : > { %s845_s11 = scalar_lea.vmem %s1044_s0, %s536_s8  ;;  %vm222_vm0 = vcmp.lt.s32.totalorder (!%p537_p11), %v220_v0, 192 }
  0x1a   : > { %224 = vst.msk [vmem:[#allocation4] sm:$0x3] (!%p537_p11), %vm222_vm0, %v751_v1  ;;  %225 = vst.msk [vmem:[#allocation6] sm:$0x3] (!%p537_p11), %vm222_vm0, %v751_v1 }
  0x1e PF: > { %v228_v2 = vld [vmem:[%s1046_s2 + $0x8] sm:$0xff]  ;;  %v230_v3 = vld [vmem:[%s1046_s2 + $0x18] sm:$0xff]  ;;  %v227_v4 = vld [vmem:[%s1046_s2] sm:$0xff]  ;;  %v752_v9 = vmov 0.0   ;;  %vm259_vm1 = vcmask 1043456   ;;  %vm255_vm2 = vcmask 818176  }
  0x1f   : > { %v551_v5 = vpack.c.bf16 %v230_v3, %v228_v2  ;;  %v229_v6 = vld [vmem:[%s1046_s2 + $0x10] sm:$0xff]  ;;  %v232_v7 = vld [vmem:[%s1046_s2 + $0x28] sm:$0xff]  ;;  %v234_v8 = vld [vmem:[%s1046_s2 + $0x38] sm:$0xff]  ;;  %330 = vmatprep.mubr.f32.mxu0 %v752_v9  ;;  %s550_s17 = sshll.u32 %s808_s22, 8  ;;  %s429_s23 = sshll.u32 %s847_s12, 4  ;;  %vm338_vm3 = vcmask 523264   ;;  %s942_s23 = int_to_ptr.vmem [resolvable:$true] %s429_s23 }
  0x20   : > { %v553_v10 = vpack.c.bf16 %v229_v6, %v227_v4  ;;  %v555_v11 = vpack.c.bf16 %v234_v8, %v232_v7  ;;  %v231_v12 = vld [vmem:[%s1046_s2 + $0x20] sm:$0xff]  ;;  %v233_v13 = vld [vmem:[%s1046_s2 + $0x30] sm:$0xff]  ;;  %v236_v14 = vld [vmem:[%s1046_s2 + $0x48] sm:$0xff]  ;;  %s940_s26 = scalar_lea.hbm %s1047_s3, %s550_s17  ;;  %s415_s6 = scalar_lea.sflag [#allocation3], %s205_s30 }
  0x21   : > { %552 = vmatprep.subr.bf16.mxu0 %v551_v5  ;;  %v238_v15 = vld [vmem:[%s1046_s2 + $0x58] sm:$0xff]  ;;  %v557_v16 = vpack.c.bf16 %v233_v13, %v231_v12  ;;  %v235_v18 = vld [vmem:[%s1046_s2 + $0x40] sm:$0xff]  ;;  %v237_v19 = vld [vmem:[%s1046_s2 + $0x50] sm:$0xff]  ;;  %s631_s7 = scalar_lea.vmem %s942_s23, 256  ;;  %s753_s8 = smov [#allocation2]  }
  0x22   : > { %554 = vmatpush1.bf16.msra.mxu0 %v553_v10  ;;  %v559_v17 = vpack.c.bf16 %v238_v15, %v236_v14  ;;  %v240_v20 = vld [vmem:[%s1046_s2 + $0x68] sm:$0xff]  ;;  %v242_v21 = vld [vmem:[%s1046_s2 + $0x78] sm:$0xff]  ;;  %v561_v22 = vpack.c.bf16 %v237_v19, %v235_v18  ;;  %v239_v24 = vld [vmem:[%s1046_s2 + $0x60] sm:$0xff]  ;;  %p632_p12 = scmp.ne.s32.totalorder %s942_s23, %s631_s7  ;;  %s635_s9 = sshll.u32 %s753_s8, 4  ;;  %s636_s9 = int_to_ptr.vmem [resolvable:$false] %s635_s9 }
  0x23   : > { %556 = vmatprep.subr.bf16.mxu0 %v555_v11  ;;  %v563_v23 = vpack.c.bf16 %v242_v21, %v240_v20  ;;  %v241_v25 = vld [vmem:[%s1046_s2 + $0x70] sm:$0xff]  ;;  %v244_v26 = vld [vmem:[%s1046_s2 + $0x88] sm:$0xff]  ;;  %v246_v27 = vld [vmem:[%s1046_s2 + $0x98] sm:$0xff]  ;;  %s637_s10 = scalar_lea.vmem %s636_s9, 512  ;;  %p638_p1 = scmp.lt.s32.totalorder %s942_s23, %s636_s9 }
  0x24   : > { %v565_v28 = vpack.c.bf16 %v241_v25, %v239_v24  ;;  %v567_v29 = vpack.c.bf16 %v246_v27, %v244_v26  ;;  %v243_v30 = vld [vmem:[%s1046_s2 + $0x80] sm:$0xff]  ;;  %v245_v31 = vld [vmem:[%s1046_s2 + $0x90] sm:$0xff]  ;;  %v248_v32 = vld [vmem:[%s1046_s2 + $0xa8] sm:$0xff]  ;;  %p633_p13 = pnand %p632_p12, %p827_p5  ;;  %p639_p3 = scmp.lt.s32.totalorder %s637_s10, %s631_s7 }
  0x25   : > { %v250_v33 = vld [vmem:[%s1046_s2 + $0xb8] sm:$0xff]  ;;  %v569_v34 = vpack.c.bf16 %v245_v31, %v243_v30  ;;  %v247_v36 = vld [vmem:[%s1046_s2 + $0xa0] sm:$0xff]  ;;  %v249_v37 = vld [vmem:[%s1046_s2 + $0xb0] sm:$0xff] }
  0x26   : > { %558 = vmatpush1.bf16.msra.mxu0 %v557_v16  ;;  %v571_v35 = vpack.c.bf16 %v250_v33, %v248_v32  ;;  %v573_v38 = vpack.c.bf16 %v249_v37, %v247_v36  ;;  %v252_v39 = vld [vmem:[%s1046_s2 + $0xc8] sm:$0xf]  ;;  %v251_v40 = vld [vmem:[%s1046_s2 + $0xc0] sm:$0xf]  ;;  %p634_p0 = pneg %p633_p13  ;;  %p640_p4 = por %p639_p3, %p638_p1 }
  0x27   : > { %560 = vmatprep.subr.bf16.mxu0 %v559_v17  ;;  %v226_v41 = vld [vmem:[%s845_s11] sm:$0xff]  ;;  %v254_v43 = vld [vmem:[%s1045_s1 + $0x8] sm:$0xff] }
  0x28   : > { %v253_v42 = vld [vmem:[%s1045_s1] sm:$0xff]  ;;  %p641_p7 = pnand %p640_p4, %p634_p0 }
  0x2a   : > { %562 = vmatpush1.bf16.msra.mxu0 %v561_v22 }
  0x2b   : > { %564 = vmatprep.subr.bf16.mxu0 %v563_v23 }
  0x2e   : > { %566 = vmatpush1.bf16.msra.mxu0 %v565_v28 }
  0x2f   : > { %568 = vmatprep.subr.bf16.mxu0 %v567_v29 }
  0x32   : > { %570 = vmatpush1.bf16.msra.mxu0 %v569_v34 }
  0x33   : > { %572 = vmatprep.subr.bf16.mxu0 %v571_v35 }
  0x36   : > { %574 = vmatpush1.bf16.msra.mxu0 %v573_v38 }
  0x37   : > { %538 = vmatprep.subr.msk.mxu0 %vm259_vm1, %v252_v39 }
  0x3a   : > { %539 = vmatpush1.msk.msra.mxu0 %vm259_vm1, %v251_v40 }
  0x3b   : > { %540 = vmatmul.mubr.msk.f32.vlgmr.msra.gmra.mrb[0].mxu0 %vm255_vm2, %v226_v41 }
 0x10e   : > { %v332_v44 = vpop.f32.mrb[0].mxu0 }
 0x10f   : > { %v333_v45 = vadd.f32 %v332_v44, %v253_v42  ;;  %v334_v46 = vpop.f32.mrb[1].mxu0 }
 0x110   : > { %v335_v47 = vadd.f32 %v334_v46, %v254_v43 }
 0x111   : > { %v341_v48 = vrot.slane %v333_v45, 4  ;;  %v379_v49 = vmul.f32 %v333_v45, %v333_v45  ;;  %337 = vst [vmem:[%s847_s12] sm:$0xff] %v333_v45 }
 0x112   : > { %339 = vst.msk [vmem:[%s847_s12 + $0x8] sm:$0xff] %vm338_vm3, %v335_v47  ;;  %v347_v50 = vsel %vm338_vm3, %v335_v47, 0.0  ;;  %v380_v51 = vmul.f32 %v335_v47, %v335_v47 }
 0x113   : > { %v342_v52 = vadd.f32 %v341_v48, %v333_v45  ;;  %v381_v53 = vrot.slane %v379_v49, 4  ;;  %v348_v54 = vrot.slane %v347_v50, 4 }
 0x114   : > { %644 = shalt.err (!%p641_p7)
}
 0x115   : > { %s645_s30 = scalar_lea.hbm %s940_s26, 256  ;;  %s649_s14 = scalar_lea.hbm %s1047_s3, 1024 }
 0x116   : > { %p646_p8 = scmp.ne.s32.totalorder %s940_s26, %s645_s30  ;;  %p650_p11 = scmp.lt.u32.totalorder %s940_s26, %s1047_s3 }
 0x117   : > { %p651_p12 = scmp.lt.u32.totalorder %s649_s14, %s645_s30  ;;  %p653_p0 = scmp.lt.u32.totalorder %s645_s30, %s940_s26 }
 0x118   : > { %p647_p9 = pnand %p646_p8, %p827_p5 }
 0x119   : > { %p652_p13 = por %p651_p12, %p650_p11 }
 0x11a   : > { %p648_p10 = pneg %p647_p9 }
 0x11b   : > { %p654_p1 = por %p653_p0, %p652_p13 }
 0x11d   : > { %p655_p3 = pnand %p654_p1, %p648_p10 }
 0x11f   : > { %658 = shalt.err (!%p655_p3)
}
 0x120   : > { %575 = dma.vmem_to_hbm [thread:$0]  (%p827_p5), %s942_s23, 256, %s940_s26, %s415_s6   ;;  %v387_v55 = vsel %vm338_vm3, %v380_v51, 0.0  ;;  %v754_v56 = vmov 1966171168   ;;  %v360_v58 = vlaneseq  ;;  %v343_v59 = vrot.slane %v342_v52, 2 }
 0x121   : > { %v358_v57 = vunpack.c.l.s4 %v754_v56  ;;  %v382_v60 = vadd.f32 %v381_v53, %v379_v49  ;;  %v349_v61 = vadd.f32 %v348_v54, %v347_v50  ;;  %v388_v62 = vrot.slane %v387_v55, 4  ;;  %v340_v21 = vld [vmem:[#allocation4] sm:$0x3]  ;;  %s755_s28 = smov [#allocation4]   ;;  %v378_v25 = vld [vmem:[#allocation6] sm:$0x3] }
 0x122   : > { %v344_v63 = vadd.f32 %v343_v59, %v342_v52  ;;  %v361_v4 = vshrl.u32 %v360_v58, 7  ;;  %s440_s17 = sshll.u32 %s755_s28, 4  ;;  %vm972_vm4 = vcmp.lt.s32.totalorder %v360_v58, 192  ;;  %s756_s23 = smov [#allocation6]   ;;  %s441_s17 = int_to_ptr.vmem [resolvable:$true] %s440_s17 }
 0x123   : > { %v383_v0 = vrot.slane %v382_v60, 2  ;;  %v350_v1 = vrot.slane %v349_v61, 2  ;;  %v389_v2 = vadd.f32 %v388_v62, %v387_v55  ;;  %v359_v3 = vunpack.c.0.s8 %v358_v57  ;;  %s451_s11 = sshll.u32 %s756_s23, 4  ;;  %s659_s25 = scalar_lea.vmem %s441_s17, 32  ;;  %s978_s11 = int_to_ptr.vmem [resolvable:$true] %s451_s11 }
 0x124   : > { %v345_v5 = vrot.slane %v344_v63, 1  ;;  %p660_p5 = scmp.ne.s32.totalorder %s441_s17, %s659_s25  ;;  %p666_p8 = scmp.lt.s32.totalorder %s441_s17, %s441_s17 }
 0x125   : > { %v384_v6 = vadd.f32 %v383_v0, %v382_v60  ;;  %v351_v7 = vadd.f32 %v350_v1, %v349_v61  ;;  %v390_v8 = vrot.slane %v389_v2, 2  ;;  %v362_v15 = vsub.s32 %v359_v3, %v361_v4  ;;  %p667_p9 = scmp.lt.s32.totalorder %s659_s25, %s659_s25 }
 0x126   : > { %v346_v14 = vadd.f32 %v345_v5, %v344_v63  ;;  %p661_p4 = pnand %p660_p5, %p106_p2 }
 0x127   : > { %v385_v9 = vrot.slane %v384_v6, 1  ;;  %v352_v10 = vrot.slane %v351_v7, 1  ;;  %v391_v11 = vadd.f32 %v390_v8, %v389_v2  ;;  %p668_p10 = por %p667_p9, %p666_p8 }
 0x128   : > { %p662_p7 = pneg %p661_p4 }
 0x129   : > { %v353_v12 = vadd.f32 %v352_v10, %v351_v7  ;;  %v392_v13 = vrot.slane %v391_v11, 1  ;;  %v386_v18 = vadd.f32 %v385_v9, %v384_v6 }
 0x12a   : > { %p669_p11 = pnand %p668_p10, %p662_p7 }
 0x12b   : > { %v393_v16 = vadd.f32 %v392_v13, %v391_v11  ;;  %v356_v17 = vcombine.low %v346_v14, %v353_v12 }
 0x12d   : > { %v363_v19 = vrot.slane %v356_v17, %v362_v15  ;;  %v396_v20 = vcombine.low %v386_v18, %v393_v16 }
 0x12f   : > { %v370_v22 = vrot.slane %v363_v19, %v362_v15  ;;  %v403_v23 = vrot.slane %v396_v20, %v362_v15 }
 0x131   : > { %v372_v26 = vadd.f32 %v370_v22, %v340_v21  ;;  %v410_v27 = vrot.slane %v403_v23, %v362_v15 }
 0x133   : > { %377 = vst.msk [vmem:[#allocation4] sm:$0x3] %vm972_vm4, %v372_v26  ;;  %v412_v28 = vadd.f32 %v410_v27, %v378_v25 }
 0x134   : > { %672 = shalt.err (!%p669_p11)
}
 0x135   : > { %s673_s7 = scalar_lea.hbm %s1048_s4, 32 }
 0x136   : > { %p674_p12 = scmp.ne.s32.totalorder %s1048_s4, %s673_s7  ;;  %p679_p1 = scmp.lt.u32.totalorder %s673_s7, %s1048_s4 }
 0x138   : > { %p675_p13 = pnand %p674_p12, %p106_p2 }
 0x13a   : > { %p676_p0 = pneg %p675_p13 }
 0x13c   : > { %p681_p3 = pnand %p679_p1, %p676_p0 }
 0x13e   : > { %684 = shalt.err (!%p681_p3)
}
 0x13f   : > { %577 = dma.vmem_to_hbm [thread:$0]  (%p106_p2), %s441_s17, 32, %s1048_s4, [#allocation5]   ;;  %413 = vst.msk [vmem:[#allocation6] sm:$0x3] %vm972_vm4, %v412_v28 }
 0x140   : > { %s685_s14 = scalar_lea.vmem %s978_s11, 32  ;;  %p692_p8 = scmp.lt.s32.totalorder %s978_s11, %s978_s11 }
 0x141   : > { %p686_p5 = scmp.ne.s32.totalorder %s978_s11, %s685_s14  ;;  %p693_p9 = scmp.lt.s32.totalorder %s685_s14, %s685_s14 }
 0x143   : > { %p687_p4 = pnand %p686_p5, %p106_p2  ;;  %p694_p10 = por %p693_p9, %p692_p8 }
 0x145   : > { %p688_p7 = pneg %p687_p4 }
 0x147   : > { %p695_p11 = pnand %p694_p10, %p688_p7 }
 0x149   : > { %698 = shalt.err (!%p695_p11)
}
 0x14a   : > { %s699_s28 = scalar_lea.hbm %s1049_s5, 32 }
 0x14b   : > { %p700_p12 = scmp.ne.s32.totalorder %s1049_s5, %s699_s28  ;;  %p705_p1 = scmp.lt.u32.totalorder %s699_s28, %s1049_s5 }
 0x14d   : > { %p701_p13 = pnand %p700_p12, %p106_p2 }
 0x14f   : > { %p702_p0 = pneg %p701_p13 }
 0x151   : > { %p707_p3 = pnand %p705_p1, %p702_p0 }
 0x153   : > { %710 = shalt.err (!%p707_p3)
}
 0x154   : > { %579 = dma.vmem_to_hbm [thread:$0]  (%p106_p2), %s978_s11, 32, %s1049_s5, [#allocation5]  }
 0x155   : > { %728 = dma.done.wait (%p106_p2), [#allocation5], 64  }
 0x156   : > { %730 = vsyncadd (%p106_p2), [#allocation5], 4294967232 }
 0x157 PF: > { %p593_p5 = scmp.ge.s32.totalorder %s749_s21, 2  ;;  %s471_s8 = sand.u32 1, %s737_s18  }
 0x158   : > { %s472_s9 = scalar_lea.sflag [#allocation3], %s471_s8 }
 0x159   : > { %p586_p4 = pnand %p593_p5, %p831_p6 }
 0x15b   : > { %732 = dma.done.wait (!%p586_p4), %s472_s9, 256  }
 0x15c   : > { %734 = vsyncadd (!%p586_p4), %s472_s9, 4294967040  ;;  %p17_p7 = scmp.ge.s32.totalorder %s812_s24, 6   ;;  %s1054_s18 = smov %s741_s19 }
 0x15d   : > { %s1055_s19 = smov %s745_s20  ;;  %s1056_s20 = smov %s823_s27 }
 0x15e   : > { %s1057_s21 = smov %s812_s24  ;;  %19 = sbr.rel (!%p17_p7) target bundleno = 4 (0x4), region = 87 }
 0x165   :  { %477 = vsyncpa [#allocation3], 1 }
 0x166   :  { %479 = vsyncpa [#allocation3 + $0x1], 1 }
 0x167   :  { %480 = vsyncpa [#allocation5], 1 }

</bundles_post_ra>
